<compile_context>
chip_gen: v6e
topology: v6e:2x2x1
jax: 0.10.0
libtpu: 0.0.40
codegen_flags: <defaults>
</compile_context>

<pallas_src>
import math

import jax
import jax.numpy as jnp
from jax.experimental import pallas as pl
from jax.experimental.pallas import tpu as pltpu


def _learned_query_kernel(q_ref, o_ref):
    # q_ref: (block_n, C) tile of the learned query. Its block index is
    #        constant across the inner (batch) grid axis, so Pallas only
    #        DMAs it from HBM once per row-tile.
    # o_ref: (block_b, block_n, C) output tile -> single broadcasted store.
    o_ref[...] = jnp.broadcast_to(q_ref[...][None], o_ref.shape)


def _sublane_pack(dtype):
    # Rows per packed 32-bit sublane: 8 for f32, 16 for bf16, 32 for int8/fp8.
    return max(8, 32 // jnp.dtype(dtype).itemsize)


def _pick_blocks(batch_size, n_queries, channels, dtype,
                 target_out_bytes=4 << 20):
    """Choose (block_b, block_n) so each output block is ~target_out_bytes,
    sublane-aligned, and the grid keeps >=2 parallel steps when possible."""
    itemsize = jnp.dtype(dtype).itemsize
    pack = _sublane_pack(dtype)
    row_bytes = channels * itemsize
    # Total rows (block_b * block_n) that fit the per-block byte target.
    max_rows = max(pack, target_out_bytes // max(1, row_bytes))

    if n_queries <= max_rows:
        # Whole query fits in one row-tile; fold batch into the block.
        block_n = n_queries
        block_b = max(1, min(batch_size, max_rows // max(1, n_queries)))
    else:
        # Large query: power-of-two, sublane-aligned row tile; 1 batch / step.
        block_n = pack
        while block_n * 2 <= max_rows:
            block_n *= 2
        block_b = 1

    n_tiles = pl.cdiv(n_queries, block_n)
    # Keep >=2 grid steps along a parallel axis so both v7x TCs get work.
    if n_tiles == 1 and block_b >= batch_size and batch_size >= 2:
        block_b = pl.cdiv(batch_size, 2)
    batch_blocks = pl.cdiv(batch_size, block_b)
    return block_b, block_n, n_tiles, batch_blocks


def learned_query_forward(query, batch_size):
    """JAX/Pallas equivalent of LearnedQuery.forward(batch_size):
    repeat the (n_queries, C) parameter to (batch_size, n_queries, C)."""
    n_queries, channels = int(query.shape[0]), int(query.shape[1])
    itemsize = jnp.dtype(query.dtype).itemsize
    # Note: channels=512 default is a multiple of 128 (lane-dense unmasked
    # stores); non-multiples still work, just with masked lane stores.
    block_b, block_n, n_tiles, batch_blocks = _pick_blocks(
        batch_size, n_queries, channels, query.dtype)

    in_bytes = n_queries * channels * itemsize
    out_bytes = batch_size * n_queries * channels * itemsize

    return pl.pallas_call(
        _learned_query_kernel,
        out_shape=jax.ShapeDtypeStruct((batch_size, n_queries, channels),
                                       query.dtype),
        # Batch innermost: input block index is constant across the inner
        # loop, so the query is not re-fetched from HBM per batch block.
        grid=(n_tiles, batch_blocks),
        in_specs=[
            pl.BlockSpec((block_n, channels), lambda i, b: (i, 0)),
        ],
        out_specs=pl.BlockSpec((block_b, block_n, channels),
                               lambda i, b: (b, i, 0)),
        compiler_params=pltpu.CompilerParams(
            dimension_semantics=("parallel", "parallel"),
            vmem_limit_bytes=32 * 1024 * 1024),
        cost_estimate=pl.CostEstimate(flops=0, transcendentals=0,
                                      bytes_accessed=in_bytes + out_bytes),
    )(query)


def _reference(query, batch_size):
    """Pure-JAX port of the PyTorch forward (einops.repeat 'n c -> b n c')."""
    return jnp.broadcast_to(query[None, :, :],
                            (batch_size, query.shape[0], query.shape[1]))


if __name__ == "__main__":
    key = jax.random.PRNGKey(0)

    # Small shapes consistent with the module: a handful of queries at the
    # module's default channel width (512, lane-aligned), batch of 2.
    batch_size = 2
    n_queries = 16
    query_channels = 512

    # Xavier-uniform init (gain for 'linear' is 1.0), matching
    # nn.init.xavier_uniform_ semantics for a (n_queries, C) parameter.
    bound = math.sqrt(6.0 / (n_queries + query_channels))
    query = jax.random.uniform(
        key, (n_queries, query_channels), dtype=jnp.float32,
        minval=-bound, maxval=bound)

    out = learned_query_forward(query, batch_size)
    out = jax.block_until_ready(out)

    ref = _reference(query, batch_size)
    assert out.shape == (batch_size, n_queries, query_channels), out.shape
    assert out.dtype == query.dtype, out.dtype
    assert jnp.array_equal(out, ref), float(jnp.max(jnp.abs(out - ref)))

    print("KERNEL_OK")
</pallas_src>

<mosaic_0001>
module attributes {stable_mosaic.version = 11 : i64} {
  func.func @_learned_query_kernel(%arg0: i32, %arg1: i32, %arg2: memref<16x512xf32, #tpu.memory_space<vmem>>, %arg3: memref<1x16x512xf32, #tpu.memory_space<vmem>>) attributes {dimension_semantics = [#tpu.dimension_semantics<parallel>, #tpu.dimension_semantics<parallel>], iteration_bounds = array<i64: 1, 2>, scalar_prefetch = 0 : i64, scratch_operands = 0 : i64, tpu.core_type = #tpu.core_type<tc>, window_params = [{transform_indices = @transform_0, window_bounds = array<i64: 16, 512>}, {transform_indices = @transform_1, window_bounds = array<i64: 1, 16, 512>}]} {
    %c0 = arith.constant 0 : index
    %c0_0 = arith.constant 0 : index
    %0 = vector.load %arg2[%c0, %c0_0] : memref<16x512xf32, #tpu.memory_space<vmem>>, vector<16x512xf32>
    %1 = vector.shape_cast %0 : vector<16x512xf32> to vector<1x16x512xf32>
    %c0_1 = arith.constant 0 : index
    %c0_2 = arith.constant 0 : index
    %c0_3 = arith.constant 0 : index
    %2 = vector.load %arg3[%c0_1, %c0_2, %c0_3] : memref<1x16x512xf32, #tpu.memory_space<vmem>>, vector<1x16x512xf32>
    tpu.vector_store %arg3[%c0_1, %c0_2, %c0_3], %1 {strides = array<i32>} : memref<1x16x512xf32, #tpu.memory_space<vmem>>, vector<1x16x512xf32>,
    return
  }
  func.func @transform_0(%arg0: i32, %arg1: i32) -> (i32, i32) {
    %c0_i32 = arith.constant 0 : i32
    %c0_i32_0 = arith.constant 0 : i32
    return %arg0, %c0_i32 : i32, i32
  }
  func.func @transform_1(%arg0: i32, %arg1: i32) -> (i32, i32, i32) {
    %c0_i32 = arith.constant 0 : i32
    %c0_i32_0 = arith.constant 0 : i32
    return %arg1, %arg0, %c0_i32 : i32, i32, i32
  }
}

</mosaic_0001>

<bundles_post_ra>
// kernel: tpu_custom_call.1
= control target key start
LH: loop header
LB: loop body
LE: loop exit
PB: predicated region body
PF: predicated region fallthrough
CT: control target
= control target key end

     0   :  { %6 = vsyncpa [#allocation3], 0  ;;  %s580_s0 = inlined_call_operand.hbm [shape: f32[16,512], index: 0, kind: input, shape index: {}]   ;;  %s581_s1 = inlined_call_operand.hbm [shape: f32[2,16,512], index: 1, kind: output, shape index: {}]  }
   0x1   :  { %7 = vsyncpa [#allocation4], 0 }
   0x2   :  { %9 = vsyncpa [#allocation4 + $0x1], 0  ;;  %s450_s6 = smov 0   ;;  %s452_s7 = smov 0  }
   0x3   :  { %s454_s8 = smov 0   ;;  %s456_s9 = smov 0  }
   0x4   :  { %s458_s10 = smov 0   ;;  %s460_s11 = smov 0  }
   0x5 LB: > { %s243_s12 = sadd.s32 4294967295, %s432_s11   ;;  %s244_s13 = sadd.s32 4294967294, %s432_s11   ;;  %s432_s11 = sphi %s460_s11, %s15_s11   ;;  %s428_s10 = sphi %s458_s10, %s590_s10   ;;  %s424_s9 = sphi %s456_s9, %s589_s9   ;;  %s420_s8 = sphi %s454_s8, %s588_s8   ;;  %s416_s7 = sphi %s452_s7, %s587_s7   ;;  %s412_s6 = sphi %s450_s6, %s586_s6  }
   0x6   : > { %s24_s14 = sadd.s32 1, %s428_s10  ;;  %s62_s15 = sadd.s32 1, %s420_s8 }
   0x7   : > { %p25_p0 = scmp.ge.s32.totalorder %s24_s14, 2  ;;  %p72_p1 = scmp.ne.s32.totalorder %s420_s8, %s416_s7 }
   0x8   : > { %p73_p2 = scmp.eq.s32.totalorder %s243_s12, 1  ;;  %p78_p3 = scmp.ne.s32.totalorder %s416_s7, %s412_s6 }
   0x9   : > { %s592_s14 = smov (%p25_p0, %s24_s14), 0  ;;  %p79_p5 = scmp.eq.s32.totalorder %s244_s13, 1 }
   0xa   : > { %p490_p4 = por %p73_p2, %p72_p1  ;;  %s57_s17 = ssub.s32 %s428_s10, %s592_s14 }
   0xb   : > { %p245_p6 = scmp.ge.s32.totalorder %s432_s11, 1  ;;  %p60_p7 = scmp.eq.s32.totalorder %s57_s17, 0 }
   0xc   : > { %p497_p8 = por %p79_p5, %p78_p3  ;;  %p86_p9 = scmp.lt.s32.totalorder %s432_s11, 3 }
   0xd   : > { %s503_s19 = scalar_select %p60_p7, %s420_s8, %s62_s15  }
   0xe   : > { %p505_p10 = pnand %p245_p6, %p86_p9  ;;  %p509_p11 = scmp.eq.s32.totalorder %s243_s12, 0 }
   0xf   : > { %s434_s22 = smov [#allocation2]  }
  0x10   : > { %p262_p12 = pneg %p505_p10  ;;  %s102_s23 = sshll.u32 %s434_s22, 4  ;;  %s103_s23 = int_to_ptr.vmem [resolvable:$true] %s102_s23 }
  0x11   : > { %s337_s24 = scalar_lea.vmem %s103_s23, 1024  ;;  %p345_p5 = scmp.lt.s32.totalorder %s103_s23, %s103_s23 }
  0x12   : > { %p263_p13 = pnand %p509_p11, %p262_p12  ;;  %p338_p1 = scmp.ne.s32.totalorder %s103_s23, %s337_s24 }
  0x13   : > { %p346_p6 = scmp.lt.s32.totalorder %s337_s24, %s337_s24 }
  0x14   : > { %p328_p0 = pneg %p263_p13 }
  0x15   : > { %p347_p7 = por %p346_p6, %p345_p5 }
  0x16   : > { %p340_p2 = pnand %p338_p1, %p328_p0 }
  0x18   : > { %p341_p3 = pneg %p340_p2 }
  0x1a   : > { %p348_p9 = pnand %p347_p7, %p341_p3 }
  0x1c   : > { %351 = shalt.err (!%p348_p9)
}
  0x1d   : > { %s435_s25 = smov 512   ;;  %s436_s26 = smov 32  }
  0x1e   : > { %265 = dma.hbm_to_vmem [thread:$0]  (!%p263_p13), %s580_s0, 1024, %s103_s23, [#allocation3], %s435_s25, %s435_s25, %s436_s26  }
  0x1f   : > { %118 = sbr.rel (%p505_p10) target bundleno = 63 (0x3f), region = 24 }
  0x24   : > { %403 = dma.done.wait (%p509_p11), [#allocation3], 1024  }
  0x25   : > { %405 = vsyncadd (%p509_p11), [#allocation3], 4294966272  ;;  %s130_s29 = sand.u32 1, %s416_s7   ;;  %s255_s2 = sshll.u32 %s424_s9, 10  ;;  %v135_v0 = vld [vmem:[#allocation2] sm:$0xff]  ;;  %v136_v1 = vld [vmem:[#allocation2 + $0x8] sm:$0xff] }
  0x26   : > { %s249_s30 = sshll.u32 %s130_s29, 6  ;;  %v137_v2 = vld [vmem:[#allocation2 + $0x10] sm:$0xff]  ;;  %s531_s13 = scalar_lea.hbm %s581_s1, %s255_s2  ;;  %v138_v3 = vld [vmem:[#allocation2 + $0x18] sm:$0xff]  ;;  %v139_v4 = vld [vmem:[#allocation2 + $0x20] sm:$0xff] }
  0x27   : > { %s132_s3 = scalar_lea.vmem [#allocation5], %s249_s30  ;;  %v140_v5 = vld [vmem:[#allocation2 + $0x28] sm:$0xff]  ;;  %v141_v6 = vld [vmem:[#allocation2 + $0x30] sm:$0xff]  ;;  %v142_v7 = vld [vmem:[#allocation2 + $0x38] sm:$0xff]  ;;  %s535_s9 = scalar_lea.sflag [#allocation4], %s130_s29 }
  0x28   : > { %s168_s4 = sshll.u32 %s132_s3, 4  ;;  %143 = vst [vmem:[%s132_s3] sm:$0xff] %v135_v0  ;;  %144 = vst [vmem:[%s132_s3 + $0x8] sm:$0xff] %v136_v1  ;;  %s437_s17 = smov [#allocation5]   ;;  %s533_s4 = int_to_ptr.vmem [resolvable:$true] %s168_s4 }
  0x29   : > { %145 = vst [vmem:[%s132_s3 + $0x10] sm:$0xff] %v137_v2  ;;  %146 = vst [vmem:[%s132_s3 + $0x18] sm:$0xff] %v138_v3  ;;  %s352_s15 = scalar_lea.vmem %s533_s4, 1024  ;;  %s356_s20 = sshll.u32 %s437_s17, 4  ;;  %s357_s20 = int_to_ptr.vmem [resolvable:$false] %s356_s20 }
  0x2a   : > { %147 = vst [vmem:[%s132_s3 + $0x20] sm:$0xff] %v139_v4  ;;  %148 = vst [vmem:[%s132_s3 + $0x28] sm:$0xff] %v140_v5  ;;  %p353_p10 = scmp.ne.s32.totalorder %s533_s4, %s352_s15  ;;  %s358_s21 = scalar_lea.vmem %s357_s20, 2048 }
  0x2b   : > { %149 = vst [vmem:[%s132_s3 + $0x30] sm:$0xff] %v141_v6  ;;  %150 = vst [vmem:[%s132_s3 + $0x38] sm:$0xff] %v142_v7  ;;  %p359_p13 = scmp.lt.s32.totalorder %s533_s4, %s357_s20  ;;  %p360_p0 = scmp.lt.s32.totalorder %s358_s21, %s352_s15 }
  0x2c   : > { %p354_p11 = pnand %p353_p10, %p490_p4 }
  0x2d   : > { %p361_p1 = por %p360_p0, %p359_p13 }
  0x2e   : > { %p355_p12 = pneg %p354_p11 }
  0x30   : > { %p362_p2 = pnand %p361_p1, %p355_p12 }
  0x32   : > { %365 = shalt.err (!%p362_p2)
}
  0x33   : > { %s366_s22 = scalar_lea.hbm %s531_s13, 1024  ;;  %s370_s25 = scalar_lea.hbm %s581_s1, 2048 }
  0x34   : > { %p367_p3 = scmp.ne.s32.totalorder %s531_s13, %s366_s22  ;;  %p371_p7 = scmp.lt.s32.totalorder %s531_s13, %s581_s1 }
  0x35   : > { %p372_p9 = scmp.lt.s32.totalorder %s370_s25, %s366_s22 }
  0x36   : > { %p368_p5 = pnand %p367_p3, %p490_p4 }
  0x37   : > { %p373_p10 = por %p372_p9, %p371_p7 }
  0x38   : > { %p369_p6 = pneg %p368_p5 }
  0x3a   : > { %p374_p11 = pnand %p373_p10, %p369_p6 }
  0x3c   : > { %377 = shalt.err (!%p374_p11)
}
  0x3d   : > { %s438_s28 = smov 512   ;;  %s439_s29 = smov 32  }
  0x3e   : > { %260 = dma.vmem_to_hbm [thread:$0]  (%p490_p4), %s533_s4, 1024, %s531_s13, %s535_s9, %s438_s28, %s438_s28, %s439_s29  }
  0x3f PF: > { %p272_p12 = scmp.ge.s32.totalorder %s432_s11, 2  ;;  %s183_s30 = sand.u32 1, %s412_s6  }
  0x40   : > { %s184_s2 = scalar_lea.sflag [#allocation4], %s183_s30 }
  0x41   : > { %p267_p13 = pnand %p272_p12, %p497_p8 }
  0x43   : > { %p268_p0 = pneg %p267_p13 }
  0x45   : > { %407 = dma.done.wait (%p268_p0), %s184_s2, 1024  }
  0x46   : > { %409 = vsyncadd (%p268_p0), %s184_s2, 4294966272  ;;  %s15_s11 = sadd.s32 1, %s432_s11   ;;  %s586_s6 = smov %s416_s7 }
  0x47   : > { %p12_p1 = scmp.ge.s32.totalorder %s15_s11, 4   ;;  %s587_s7 = smov %s420_s8 }
  0x48   : > { %s588_s8 = smov %s503_s19  ;;  %s589_s9 = smov %s428_s10 }
  0x49   : > { %s590_s10 = smov %s592_s14  ;;  %14 = sbr.rel (!%p12_p1) target bundleno = 5 (0x5), region = 62 }
  0x4e   :  { %189 = vsyncpa [#allocation3], 1 }
  0x4f   :  { %191 = vsyncpa [#allocation3 + $0x1], 1 }
  0x50   :  { %192 = vsyncpa [#allocation4], 1 }
  0x51   :  { %194 = vsyncpa [#allocation4 + $0x1], 1 }

</bundles_post_ra>
